<compile_context>
chip_gen: v7x
topology: tpu7x:2x2x1
jax: 0.10.0
libtpu: 0.0.40
codegen_flags: <defaults>
</compile_context>

<pallas_src>
import jax
import jax.numpy as jnp
from jax.experimental import pallas as pl
from jax.experimental.pallas import tpu as pltpu

# ---------------- configuration (small, consistent with the module) ----------------
B = 2          # batch
S = 8          # sequence length (nq == nk)
D_MODEL = 32   # d_model
NUM_HEAD = 4   # num_head
D_K = D_MODEL // NUM_HEAD
D_V = D_K
NUM_MEM = 8    # num_memory ("m" memory slots)
D_FF = 64      # d_ff
EPS = 1e-5     # nn.LayerNorm default eps

HDK = NUM_HEAD * D_K
HDV = NUM_HEAD * D_V
BS = B * S                       # all query/key rows of all batches
SM = BS + NUM_MEM                # concatenated key axis: [all key rows | memory slots]
SQRT_DK = float(D_K) ** 0.5
SQRT_M = float(NUM_MEM) ** 0.5
INV_SQRT_DK = 1.0 / SQRT_DK
NEG_BIG = -1e30


# ------------------------------- Pallas kernel --------------------------------
def encoder_layer_kernel(x_ref, bias_ref, wqkv_ref, mem_ref, wow1_ref, w2_ref,
                         vec_ref, o_ref):
    # ---- unpack parameter slab: one row (sublane) per parameter, lane offset 0 ----
    vec = vec_ref[...]                                   # (8, 128) f32
    b_qkv = vec[0:1, :3 * HDK]                           # (1, 96) = [bq|bk|bv]
    bo = vec[1:2, :D_MODEL]
    b1 = vec[2:3, :D_FF]
    b2 = vec[3:4, :D_MODEL]
    g1 = vec[4:5, :D_MODEL]
    bt1 = vec[5:6, :D_MODEL]
    g2 = vec[6:7, :D_MODEL]
    bt2 = vec[7:8, :D_MODEL]

    x = x_ref[...]                                       # (BS, D) f32 (queries == keys == values)

    # ---- fused QKV projection: one bf16 MXU pass, f32 accumulate -----------------
    qkv = jnp.dot(x.astype(jnp.bfloat16), wqkv_ref[...],
                  preferred_element_type=jnp.float32) + b_qkv      # (BS, 3*HDK) f32
    q = qkv[:, 0 * HDK:1 * HDK] * INV_SQRT_DK            # fold 1/sqrt(dk) into q (small tensor)
    k = qkv[:, 1 * HDK:2 * HDK]
    v = qkv[:, 2 * HDK:3 * HDK]

    # one head-split layout op per tensor: (BS, H*dk) -> (H, BS, dk)
    q_h = jnp.stack([q[:, h * D_K:(h + 1) * D_K] for h in range(NUM_HEAD)],
                    axis=0).astype(jnp.bfloat16)         # (H, BS, dk)
    k_h = jnp.stack([k[:, h * D_K:(h + 1) * D_K] for h in range(NUM_HEAD)],
                    axis=0).astype(jnp.bfloat16)
    v_h = jnp.stack([v[:, h * D_V:(h + 1) * D_V] for h in range(NUM_HEAD)],
                    axis=0).astype(jnp.bfloat16)

    # memory keys/values arrive pre-scaled + head-split from the wrapper
    mem = mem_ref[...]                                   # (2H, M, dk) bf16
    k_full = jnp.concatenate([k_h, mem[:NUM_HEAD]], axis=1)        # (H, BS+M, dk)
    v_full = jnp.concatenate([v_h, mem[NUM_HEAD:]], axis=1)        # (H, BS+M, dv)

    # ---- attention: one batched score einsum, one softmax, one batched AV einsum --
    scores = jnp.einsum('hqd,hkd->hqk', q_h, k_full,
                        preferred_element_type=jnp.float32)        # (H, BS, BS+M)
    # additive bias kills cross-batch pairs and padded keys; memory columns get 0
    scores = scores + bias_ref[...]                      # (BS, BS+M) broadcast over heads

    row_max = scores.max(axis=-1, keepdims=True)
    e = jnp.exp(scores - row_max)
    inv_denom = pl.reciprocal(e.sum(axis=-1, keepdims=True), approx=True)
    out_h = jnp.einsum('hqk,hkd->hqd', e.astype(jnp.bfloat16), v_full,
                       preferred_element_type=jnp.float32) * inv_denom  # (H, BS, dv)

    # merge heads back to the lane dim (head-major column order, matches reference)
    att = jnp.concatenate([out_h[h] for h in range(NUM_HEAD)], axis=-1)  # (BS, H*dv)

    # ---- output projection + residual + LayerNorm (MultiHeadAttention) -----------
    wow1 = wow1_ref[...]                                 # (HDV, 128 + D_FF) bf16
    wo = wow1[:, :D_MODEL]                               # lane offset 0
    w1 = wow1[:, 128:128 + D_FF]                         # lane offset 128 (aligned)

    mh = jnp.dot(att.astype(jnp.bfloat16), wo, preferred_element_type=jnp.float32) + bo
    x1 = x + mh                                          # dropout = identity (eval)
    mu = jnp.mean(x1, axis=-1, keepdims=True)
    var = jnp.mean((x1 - mu) ** 2, axis=-1, keepdims=True)
    att_out = (x1 - mu) * jax.lax.rsqrt(var + EPS) * g1 + bt1

    # ---- position-wise feed forward + residual + LayerNorm ------------------------
    hdd = jnp.maximum(
        jnp.dot(att_out.astype(jnp.bfloat16), w1, preferred_element_type=jnp.float32) + b1,
        0.0)
    ff = jnp.dot(hdd.astype(jnp.bfloat16), w2_ref[...],
                 preferred_element_type=jnp.float32) + b2

    y = att_out + ff                                     # dropout = identity (eval)
    mu2 = jnp.mean(y, axis=-1, keepdims=True)
    var2 = jnp.mean((y - mu2) ** 2, axis=-1, keepdims=True)
    o_ref[...] = (y - mu2) * jax.lax.rsqrt(var2 + EPS) * g2 + bt2
    # TODO(synk): output stays (BS, 32) (masked vst); fold to a 128-lane slab if B/S grow.


# --------------------------------- wrapper ------------------------------------
def _full_spec(shape):
    nd = len(shape)
    return pl.BlockSpec(shape, lambda i, _n=nd: (0,) * _n)


def _pad_row(vecs, width):
    v = jnp.concatenate(vecs, axis=1) if len(vecs) > 1 else vecs[0]
    return jnp.pad(v, ((0, 0), (0, 128 - width)))


def encoder_layer(queries, keys, values, attention_mask, p):
    # TODO(synk): only the encoder self-attention path (queries == keys == values) is
    # implemented in-kernel; the memory-augmented encoder always calls it that way.
    del keys, values
    x = queries.reshape(BS, D_MODEL)

    # fused QKV weight slab (bf16: one MXU pass, half the DMA bytes)
    w_qkv = jnp.concatenate([p["wq"], p["wk"], p["wv"]], axis=1).astype(jnp.bfloat16)  # (D, 96)

    # memory slots: pre-scale and pre-split per head in the wrapper (parameters, one-time cost)
    mk_h = (SQRT_DK * p["mk"]).reshape(NUM_MEM, NUM_HEAD, D_K).transpose(1, 0, 2)      # (H, M, dk)
    mv_h = (SQRT_M * p["mv"]).reshape(NUM_MEM, NUM_HEAD, D_V).transpose(1, 0, 2)       # (H, M, dv)
    mem = jnp.concatenate([mk_h, mv_h], axis=0).astype(jnp.bfloat16)                   # (2H, M, dk)

    # [wo | w1] slab with wo padded to 128 lanes so w1 starts at an aligned lane offset
    wow1 = jnp.concatenate(
        [jnp.pad(p["wo"], ((0, 0), (0, 128 - D_MODEL))), p["w1"]],
        axis=1).astype(jnp.bfloat16)                                                   # (32, 192)
    w2 = p["w2"].astype(jnp.bfloat16)                                                  # (64, 32)

    # bias / LayerNorm-parameter slab: one parameter per 128-lane row
    vec = jnp.concatenate([
        _pad_row([p["bq"], p["bk"], p["bv"]], 3 * HDK),
        _pad_row([p["bo"]], D_MODEL),
        _pad_row([p["b1"]], D_FF),
        _pad_row([p["b2"]], D_MODEL),
        _pad_row([p["g1"]], D_MODEL),
        _pad_row([p["bt1"]], D_MODEL),
        _pad_row([p["g2"]], D_MODEL),
        _pad_row([p["bt2"]], D_MODEL),
    ], axis=0).astype(jnp.float32)                                                     # (8, 128)

    # additive attention bias over the concatenated [all-batch key rows | memory] axis:
    # other-batch key rows and padded keys get -1e30, memory columns get 0.
    batch_of_row = jnp.arange(BS, dtype=jnp.int32) // S
    same_batch = batch_of_row[:, None] == batch_of_row[None, :]                        # (BS, BS)
    key_padded = attention_mask.reshape(BS) > 0.5                                      # (BS,)
    bias_keys = jnp.where(same_batch & (~key_padded)[None, :], 0.0, NEG_BIG)
    bias = jnp.concatenate(
        [bias_keys, jnp.zeros((BS, NUM_MEM))], axis=1).astype(jnp.float32)             # (BS, BS+M)

    inputs = (x, bias, w_qkv, mem, wow1, w2, vec)

    grid_spec = pltpu.PrefetchScalarGridSpec(
        num_scalar_prefetch=0,
        grid=(1,),                                   # whole problem in one invocation
        in_specs=[_full_spec(a.shape) for a in inputs],
        out_specs=_full_spec((BS, D_MODEL)),
    )

    out = pl.pallas_call(
        encoder_layer_kernel,
        out_shape=jax.ShapeDtypeStruct((BS, D_MODEL), jnp.float32),
        grid_spec=grid_spec,
        compiler_params=pltpu.CompilerParams(dimension_semantics=("arbitrary",)),
    )(*inputs)
    return out.reshape(B, S, D_MODEL)


# --------------------------- pure-JAX reference --------------------------------
def reference(queries, keys, values, mask, p):
    hi = jax.lax.Precision.HIGHEST
    mm = lambda a, b: jnp.matmul(a, b, precision=hi)
    q = mm(queries, p["wq"]) + p["bq"]
    k = mm(keys, p["wk"]) + p["bk"]
    v = mm(values, p["wv"]) + p["bv"]
    mk = SQRT_DK * jnp.broadcast_to(p["mk"], (B, NUM_MEM, HDK))
    mv = SQRT_M * jnp.broadcast_to(p["mv"], (B, NUM_MEM, HDV))
    kf = jnp.concatenate([k, mk], axis=1)
    vf = jnp.concatenate([v, mv], axis=1)
    qh = q.reshape(B, S, NUM_HEAD, D_K).transpose(0, 2, 1, 3)
    kh = kf.reshape(B, S + NUM_MEM, NUM_HEAD, D_K).transpose(0, 2, 3, 1)
    vh = vf.reshape(B, S + NUM_MEM, NUM_HEAD, D_V).transpose(0, 2, 1, 3)
    att = mm(qh, kh) / SQRT_DK
    mb = (mask[:, None, :, :] > 0.5)                      # (B,1,1,S)
    att = jnp.concatenate([jnp.where(mb, -jnp.inf, att[..., :S]), att[..., S:]], axis=-1)
    att = jax.nn.softmax(att, axis=-1)
    out = mm(att, vh).transpose(0, 2, 1, 3).reshape(B, S, HDV)
    out = mm(out, p["wo"]) + p["bo"]

    def ln(x, g, b):
        mu = jnp.mean(x, -1, keepdims=True)
        var = jnp.mean((x - mu) ** 2, -1, keepdims=True)
        return (x - mu) / jnp.sqrt(var + EPS) * g + b

    att_out = ln(queries + out, p["g1"], p["bt1"])
    ff = mm(jax.nn.relu(mm(att_out, p["w1"]) + p["b1"]), p["w2"]) + p["b2"]
    return ln(att_out + ff, p["g2"], p["bt2"])


# ----------------------------------- main --------------------------------------
if __name__ == "__main__":
    key = jax.random.PRNGKey(0)
    ks = jax.random.split(key, 20)

    # deterministic synthetic parameters (shapes follow the module's __init__)
    p = {
        "wq": 0.08 * jax.random.normal(ks[0], (D_MODEL, HDK), jnp.float32),
        "bq": 0.01 * jax.random.normal(ks[1], (1, HDK), jnp.float32),
        "wk": 0.08 * jax.random.normal(ks[2], (D_MODEL, HDK), jnp.float32),
        "bk": 0.01 * jax.random.normal(ks[3], (1, HDK), jnp.float32),
        "wv": 0.08 * jax.random.normal(ks[4], (D_MODEL, HDV), jnp.float32),
        "bv": 0.01 * jax.random.normal(ks[5], (1, HDV), jnp.float32),
        "mk": (1.0 / D_K) * jax.random.normal(ks[6], (NUM_MEM, HDK), jnp.float32),
        "mv": (1.0 / NUM_MEM) * jax.random.normal(ks[7], (NUM_MEM, HDV), jnp.float32),
        "wo": 0.08 * jax.random.normal(ks[8], (HDV, D_MODEL), jnp.float32),
        "bo": 0.01 * jax.random.normal(ks[9], (1, D_MODEL), jnp.float32),
        "g1": 1.0 + 0.05 * jax.random.normal(ks[10], (1, D_MODEL), jnp.float32),
        "bt1": 0.05 * jax.random.normal(ks[11], (1, D_MODEL), jnp.float32),
        "w1": 0.08 * jax.random.normal(ks[12], (D_MODEL, D_FF), jnp.float32),
        "b1": 0.01 * jax.random.normal(ks[13], (1, D_FF), jnp.float32),
        "w2": 0.08 * jax.random.normal(ks[14], (D_FF, D_MODEL), jnp.float32),
        "b2": 0.01 * jax.random.normal(ks[15], (1, D_MODEL), jnp.float32),
        "g2": 1.0 + 0.05 * jax.random.normal(ks[16], (1, D_MODEL), jnp.float32),
        "bt2": 0.05 * jax.random.normal(ks[17], (1, D_MODEL), jnp.float32),
    }

    x = jax.random.normal(ks[18], (B, S, D_MODEL), jnp.float32)
    queries = keys_in = values_in = x  # encoder self-attention

    # padding mask over keys: (B, 1, S), 1.0 = masked. Mask last 2 keys of batch 1.
    mask = jnp.zeros((B, 1, S), jnp.float32).at[1, 0, S - 2:].set(1.0)

    out = encoder_layer(queries, keys_in, values_in, mask, p)
    out = jax.block_until_ready(out)

    ref = jax.block_until_ready(reference(queries, keys_in, values_in, mask, p))
    assert out.shape == (B, S, D_MODEL)
    # tolerance 2e-2: kernel runs bf16 MXU operands (single pass) + approx reciprocal,
    # reference is f32 HIGHEST; elementwise/LN math in the kernel is f32.
    assert jnp.allclose(out, ref, atol=2e-2, rtol=2e-2), float(jnp.max(jnp.abs(out - ref)))

    print("KERNEL_OK")
</pallas_src>

<mosaic_0001>
module attributes {stable_mosaic.version = 11 : i64} {
  func.func @encoder_layer_kernel(%arg0: i32, %arg1: memref<16x32xf32, #tpu.memory_space<vmem>>, %arg2: memref<16x24xf32, #tpu.memory_space<vmem>>, %arg3: memref<32x96xbf16, #tpu.memory_space<vmem>>, %arg4: memref<8x8x8xbf16, #tpu.memory_space<vmem>>, %arg5: memref<32x192xbf16, #tpu.memory_space<vmem>>, %arg6: memref<64x32xbf16, #tpu.memory_space<vmem>>, %arg7: memref<8x128xf32, #tpu.memory_space<vmem>>, %arg8: memref<16x32xf32, #tpu.memory_space<vmem>>) attributes {dimension_semantics = [#tpu.dimension_semantics<arbitrary>], iteration_bounds = array<i64: 1>, scalar_prefetch = 0 : i64, scratch_operands = 0 : i64, tpu.core_type = #tpu.core_type<tc>, window_params = [{pipeline_mode = #tpu.pipeline_mode<synchronous>, transform_indices = @transform_0, window_bounds = array<i64: 16, 32>}, {pipeline_mode = #tpu.pipeline_mode<synchronous>, transform_indices = @transform_1, window_bounds = array<i64: 16, 24>}, {pipeline_mode = #tpu.pipeline_mode<synchronous>, transform_indices = @transform_2, window_bounds = array<i64: 32, 96>}, {pipeline_mode = #tpu.pipeline_mode<synchronous>, transform_indices = @transform_3, window_bounds = array<i64: 8, 8, 8>}, {pipeline_mode = #tpu.pipeline_mode<synchronous>, transform_indices = @transform_4, window_bounds = array<i64: 32, 192>}, {pipeline_mode = #tpu.pipeline_mode<synchronous>, transform_indices = @transform_5, window_bounds = array<i64: 64, 32>}, {pipeline_mode = #tpu.pipeline_mode<synchronous>, transform_indices = @transform_6, window_bounds = array<i64: 8, 128>}, {pipeline_mode = #tpu.pipeline_mode<synchronous>, transform_indices = @transform_7, window_bounds = array<i64: 16, 32>}]} {
    %c0 = arith.constant 0 : index
    %c0_0 = arith.constant 0 : index
    %0 = vector.load %arg7[%c0, %c0_0] : memref<8x128xf32, #tpu.memory_space<vmem>>, vector<8x128xf32>
    %1 = vector.extract_strided_slice %0 {offsets = [0, 0], sizes = [1, 96], strides = [1, 1]} : vector<8x128xf32> to vector<1x96xf32>
    %2 = vector.extract_strided_slice %0 {offsets = [1, 0], sizes = [1, 32], strides = [1, 1]} : vector<8x128xf32> to vector<1x32xf32>
    %3 = vector.extract_strided_slice %0 {offsets = [2, 0], sizes = [1, 64], strides = [1, 1]} : vector<8x128xf32> to vector<1x64xf32>
    %4 = vector.extract_strided_slice %0 {offsets = [3, 0], sizes = [1, 32], strides = [1, 1]} : vector<8x128xf32> to vector<1x32xf32>
    %5 = vector.extract_strided_slice %0 {offsets = [4, 0], sizes = [1, 32], strides = [1, 1]} : vector<8x128xf32> to vector<1x32xf32>
    %6 = vector.extract_strided_slice %0 {offsets = [5, 0], sizes = [1, 32], strides = [1, 1]} : vector<8x128xf32> to vector<1x32xf32>
    %7 = vector.extract_strided_slice %0 {offsets = [6, 0], sizes = [1, 32], strides = [1, 1]} : vector<8x128xf32> to vector<1x32xf32>
    %8 = vector.extract_strided_slice %0 {offsets = [7, 0], sizes = [1, 32], strides = [1, 1]} : vector<8x128xf32> to vector<1x32xf32>
    %c0_1 = arith.constant 0 : index
    %c0_2 = arith.constant 0 : index
    %9 = vector.load %arg1[%c0_1, %c0_2] : memref<16x32xf32, #tpu.memory_space<vmem>>, vector<16x32xf32>
    %10 = arith.truncf %9 : vector<16x32xf32> to vector<16x32xbf16>
    %c0_3 = arith.constant 0 : index
    %c0_4 = arith.constant 0 : index
    %11 = vector.load %arg3[%c0_3, %c0_4] : memref<32x96xbf16, #tpu.memory_space<vmem>>, vector<32x96xbf16>
    %cst = arith.constant dense<0.000000e+00> : vector<16x96xf32>
    %12 = tpu.matmul %10, %11, %cst {dimension_numbers = #tpu.dot_dimension_numbers<[1], [0], [0], [1], [0, 0, 1, 1], [], []>} : vector<16x32xbf16>, vector<32x96xbf16>, vector<16x96xf32> -> vector<16x96xf32>
    %13 = vector.broadcast %1 : vector<1x96xf32> to vector<16x96xf32>
    %14 = arith.addf %12, %13 : vector<16x96xf32>
    %15 = vector.extract_strided_slice %14 {offsets = [0, 0], sizes = [16, 32], strides = [1, 1]} : vector<16x96xf32> to vector<16x32xf32>
    %cst_5 = arith.constant 0.353553385 : f32
    %16 = vector.broadcast %cst_5 : f32 to vector<16x32xf32>
    %17 = arith.mulf %15, %16 : vector<16x32xf32>
    %18 = vector.extract_strided_slice %14 {offsets = [0, 32], sizes = [16, 32], strides = [1, 1]} : vector<16x96xf32> to vector<16x32xf32>
    %19 = vector.extract_strided_slice %14 {offsets = [0, 64], sizes = [16, 32], strides = [1, 1]} : vector<16x96xf32> to vector<16x32xf32>
    %20 = vector.extract_strided_slice %17 {offsets = [0, 0], sizes = [16, 8], strides = [1, 1]} : vector<16x32xf32> to vector<16x8xf32>
    %21 = vector.extract_strided_slice %17 {offsets = [0, 8], sizes = [16, 8], strides = [1, 1]} : vector<16x32xf32> to vector<16x8xf32>
    %22 = vector.extract_strided_slice %17 {offsets = [0, 16], sizes = [16, 8], strides = [1, 1]} : vector<16x32xf32> to vector<16x8xf32>
    %23 = vector.extract_strided_slice %17 {offsets = [0, 24], sizes = [16, 8], strides = [1, 1]} : vector<16x32xf32> to vector<16x8xf32>
    %24 = vector.shape_cast %20 : vector<16x8xf32> to vector<1x16x8xf32>
    %25 = vector.shape_cast %21 : vector<16x8xf32> to vector<1x16x8xf32>
    %26 = vector.shape_cast %22 : vector<16x8xf32> to vector<1x16x8xf32>
    %27 = vector.shape_cast %23 : vector<16x8xf32> to vector<1x16x8xf32>
    %28 = tpu.concatenate %24, %25, %26, %27 in 0 : vector<1x16x8xf32>, vector<1x16x8xf32>, vector<1x16x8xf32>, vector<1x16x8xf32> -> vector<4x16x8xf32>
    %29 = arith.truncf %28 : vector<4x16x8xf32> to vector<4x16x8xbf16>
    %30 = vector.extract_strided_slice %18 {offsets = [0, 0], sizes = [16, 8], strides = [1, 1]} : vector<16x32xf32> to vector<16x8xf32>
    %31 = vector.extract_strided_slice %18 {offsets = [0, 8], sizes = [16, 8], strides = [1, 1]} : vector<16x32xf32> to vector<16x8xf32>
    %32 = vector.extract_strided_slice %18 {offsets = [0, 16], sizes = [16, 8], strides = [1, 1]} : vector<16x32xf32> to vector<16x8xf32>
    %33 = vector.extract_strided_slice %18 {offsets = [0, 24], sizes = [16, 8], strides = [1, 1]} : vector<16x32xf32> to vector<16x8xf32>
    %34 = vector.shape_cast %30 : vector<16x8xf32> to vector<1x16x8xf32>
    %35 = vector.shape_cast %31 : vector<16x8xf32> to vector<1x16x8xf32>
    %36 = vector.shape_cast %32 : vector<16x8xf32> to vector<1x16x8xf32>
    %37 = vector.shape_cast %33 : vector<16x8xf32> to vector<1x16x8xf32>
    %38 = tpu.concatenate %34, %35, %36, %37 in 0 : vector<1x16x8xf32>, vector<1x16x8xf32>, vector<1x16x8xf32>, vector<1x16x8xf32> -> vector<4x16x8xf32>
    %39 = arith.truncf %38 : vector<4x16x8xf32> to vector<4x16x8xbf16>
    %40 = vector.extract_strided_slice %19 {offsets = [0, 0], sizes = [16, 8], strides = [1, 1]} : vector<16x32xf32> to vector<16x8xf32>
    %41 = vector.extract_strided_slice %19 {offsets = [0, 8], sizes = [16, 8], strides = [1, 1]} : vector<16x32xf32> to vector<16x8xf32>
    %42 = vector.extract_strided_slice %19 {offsets = [0, 16], sizes = [16, 8], strides = [1, 1]} : vector<16x32xf32> to vector<16x8xf32>
    %43 = vector.extract_strided_slice %19 {offsets = [0, 24], sizes = [16, 8], strides = [1, 1]} : vector<16x32xf32> to vector<16x8xf32>
    %44 = vector.shape_cast %40 : vector<16x8xf32> to vector<1x16x8xf32>
    %45 = vector.shape_cast %41 : vector<16x8xf32> to vector<1x16x8xf32>
    %46 = vector.shape_cast %42 : vector<16x8xf32> to vector<1x16x8xf32>
    %47 = vector.shape_cast %43 : vector<16x8xf32> to vector<1x16x8xf32>
    %48 = tpu.concatenate %44, %45, %46, %47 in 0 : vector<1x16x8xf32>, vector<1x16x8xf32>, vector<1x16x8xf32>, vector<1x16x8xf32> -> vector<4x16x8xf32>
    %49 = arith.truncf %48 : vector<4x16x8xf32> to vector<4x16x8xbf16>
    %c0_6 = arith.constant 0 : index
    %c0_7 = arith.constant 0 : index
    %c0_8 = arith.constant 0 : index
    %50 = vector.load %arg4[%c0_6, %c0_7, %c0_8] : memref<8x8x8xbf16, #tpu.memory_space<vmem>>, vector<8x8x8xbf16>
    %51 = vector.extract_strided_slice %50 {offsets = [0, 0, 0], sizes = [4, 8, 8], strides = [1, 1, 1]} : vector<8x8x8xbf16> to vector<4x8x8xbf16>
    %52 = tpu.concatenate %39, %51 in 1 : vector<4x16x8xbf16>, vector<4x8x8xbf16> -> vector<4x24x8xbf16>
    %53 = vector.extract_strided_slice %50 {offsets = [4, 0, 0], sizes = [4, 8, 8], strides = [1, 1, 1]} : vector<8x8x8xbf16> to vector<4x8x8xbf16>
    %54 = tpu.concatenate %49, %53 in 1 : vector<4x16x8xbf16>, vector<4x8x8xbf16> -> vector<4x24x8xbf16>
    "tpu.trace_start"() <{level = 10 : i32, message = "hqd,hkd->hqk"}> : () -> ()
    %cst_9 = arith.constant dense<0.000000e+00> : vector<4x16x24xf32>
    %55 = tpu.matmul %29, %52, %cst_9 {dimension_numbers = #tpu.dot_dimension_numbers<[2], [2], [1], [1], [0, 0, 0, 1, 1, 1], [0], [0]>} : vector<4x16x8xbf16>, vector<4x24x8xbf16>, vector<4x16x24xf32> -> vector<4x16x24xf32>
    "tpu.trace_stop"() : () -> ()
    %c0_10 = arith.constant 0 : index
    %c0_11 = arith.constant 0 : index
    %56 = vector.load %arg2[%c0_10, %c0_11] : memref<16x24xf32, #tpu.memory_space<vmem>>, vector<16x24xf32>
    %57 = vector.shape_cast %56 : vector<16x24xf32> to vector<1x16x24xf32>
    %58 = vector.broadcast %57 : vector<1x16x24xf32> to vector<4x16x24xf32>
    %59 = arith.addf %55, %58 : vector<4x16x24xf32>
    %cst_12 = arith.constant dense<0xFF800000> : vector<4x16xf32>
    %60 = vector.multi_reduction <maximumf>, %59, %cst_12 [2] : vector<4x16x24xf32> to vector<4x16xf32>
    %61 = vector.shape_cast %60 : vector<4x16xf32> to vector<4x16x1xf32>
    %62 = vector.broadcast %61 : vector<4x16x1xf32> to vector<4x16x24xf32>
    %63 = arith.subf %59, %62 : vector<4x16x24xf32>
    %64 = math.exp %63 : vector<4x16x24xf32>
    %cst_13 = arith.constant dense<0.000000e+00> : vector<4x16xf32>
    %65 = vector.multi_reduction <add>, %64, %cst_13 [2] : vector<4x16x24xf32> to vector<4x16xf32>
    %66 = vector.shape_cast %65 : vector<4x16xf32> to vector<4x16x1xf32>
    %67 = tpu.reciprocal %66 {approx = true} : vector<4x16x1xf32> -> vector<4x16x1xf32>
    %68 = arith.truncf %64 : vector<4x16x24xf32> to vector<4x16x24xbf16>
    "tpu.trace_start"() <{level = 10 : i32, message = "hqk,hkd->hqd"}> : () -> ()
    %cst_14 = arith.constant dense<0.000000e+00> : vector<4x16x8xf32>
    %69 = tpu.matmul %68, %54, %cst_14 {dimension_numbers = #tpu.dot_dimension_numbers<[2], [1], [1], [2], [0, 0, 0, 1, 1, 2], [0], [0]>} : vector<4x16x24xbf16>, vector<4x24x8xbf16>, vector<4x16x8xf32> -> vector<4x16x8xf32>
    "tpu.trace_stop"() : () -> ()
    %70 = vector.broadcast %67 : vector<4x16x1xf32> to vector<4x16x8xf32>
    %71 = arith.mulf %69, %70 : vector<4x16x8xf32>
    %72 = vector.extract_strided_slice %71 {offsets = [0, 0, 0], sizes = [1, 16, 8], strides = [1, 1, 1]} : vector<4x16x8xf32> to vector<1x16x8xf32>
    %73 = vector.shape_cast %72 : vector<1x16x8xf32> to vector<16x8xf32>
    %74 = vector.extract_strided_slice %71 {offsets = [1, 0, 0], sizes = [1, 16, 8], strides = [1, 1, 1]} : vector<4x16x8xf32> to vector<1x16x8xf32>
    %75 = vector.shape_cast %74 : vector<1x16x8xf32> to vector<16x8xf32>
    %76 = vector.extract_strided_slice %71 {offsets = [2, 0, 0], sizes = [1, 16, 8], strides = [1, 1, 1]} : vector<4x16x8xf32> to vector<1x16x8xf32>
    %77 = vector.shape_cast %76 : vector<1x16x8xf32> to vector<16x8xf32>
    %78 = vector.extract_strided_slice %71 {offsets = [3, 0, 0], sizes = [1, 16, 8], strides = [1, 1, 1]} : vector<4x16x8xf32> to vector<1x16x8xf32>
    %79 = vector.shape_cast %78 : vector<1x16x8xf32> to vector<16x8xf32>
    %80 = tpu.concatenate %73, %75, %77, %79 in 1 : vector<16x8xf32>, vector<16x8xf32>, vector<16x8xf32>, vector<16x8xf32> -> vector<16x32xf32>
    %c0_15 = arith.constant 0 : index
    %c0_16 = arith.constant 0 : index
    %81 = vector.load %arg5[%c0_15, %c0_16] : memref<32x192xbf16, #tpu.memory_space<vmem>>, vector<32x192xbf16>
    %82 = vector.extract_strided_slice %81 {offsets = [0, 0], sizes = [32, 32], strides = [1, 1]} : vector<32x192xbf16> to vector<32x32xbf16>
    %83 = vector.extract_strided_slice %81 {offsets = [0, 128], sizes = [32, 64], strides = [1, 1]} : vector<32x192xbf16> to vector<32x64xbf16>
    %84 = arith.truncf %80 : vector<16x32xf32> to vector<16x32xbf16>
    %cst_17 = arith.constant dense<0.000000e+00> : vector<16x32xf32>
    %85 = tpu.matmul %84, %82, %cst_17 {dimension_numbers = #tpu.dot_dimension_numbers<[1], [0], [0], [1], [0, 0, 1, 1], [], []>} : vector<16x32xbf16>, vector<32x32xbf16>, vector<16x32xf32> -> vector<16x32xf32>
    %86 = vector.broadcast %2 : vector<1x32xf32> to vector<16x32xf32>
    %87 = arith.addf %85, %86 : vector<16x32xf32>
    %88 = arith.addf %9, %87 : vector<16x32xf32>
    %cst_18 = arith.constant dense<0.000000e+00> : vector<16xf32>
    %89 = vector.multi_reduction <add>, %88, %cst_18 [1] : vector<16x32xf32> to vector<16xf32>
    %90 = vector.shape_cast %89 : vector<16xf32> to vector<16x1xf32>
    %cst_19 = arith.constant 3.200000e+01 : f32
    %91 = vector.broadcast %cst_19 : f32 to vector<16x1xf32>
    %92 = arith.divf %90, %91 : vector<16x1xf32>
    %93 = vector.broadcast %92 : vector<16x1xf32> to vector<16x32xf32>
    %94 = arith.subf %88, %93 : vector<16x32xf32>
    %95 = arith.mulf %94, %94 : vector<16x32xf32>
    %cst_20 = arith.constant dense<0.000000e+00> : vector<16xf32>
    %96 = vector.multi_reduction <add>, %95, %cst_20 [1] : vector<16x32xf32> to vector<16xf32>
    %97 = vector.shape_cast %96 : vector<16xf32> to vector<16x1xf32>
    %cst_21 = arith.constant 3.200000e+01 : f32
    %98 = vector.broadcast %cst_21 : f32 to vector<16x1xf32>
    %99 = arith.divf %97, %98 : vector<16x1xf32>
    %100 = vector.broadcast %92 : vector<16x1xf32> to vector<16x32xf32>
    %101 = arith.subf %88, %100 : vector<16x32xf32>
    %cst_22 = arith.constant 9.99999974E-6 : f32
    %102 = vector.broadcast %cst_22 : f32 to vector<16x1xf32>
    %103 = arith.addf %99, %102 : vector<16x1xf32>
    %104 = math.rsqrt %103 : vector<16x1xf32>
    %105 = vector.broadcast %104 : vector<16x1xf32> to vector<16x32xf32>
    %106 = arith.mulf %101, %105 : vector<16x32xf32>
    %107 = vector.broadcast %5 : vector<1x32xf32> to vector<16x32xf32>
    %108 = arith.mulf %106, %107 : vector<16x32xf32>
    %109 = vector.broadcast %6 : vector<1x32xf32> to vector<16x32xf32>
    %110 = arith.addf %108, %109 : vector<16x32xf32>
    %111 = arith.truncf %110 : vector<16x32xf32> to vector<16x32xbf16>
    %cst_23 = arith.constant dense<0.000000e+00> : vector<16x64xf32>
    %112 = tpu.matmul %111, %83, %cst_23 {dimension_numbers = #tpu.dot_dimension_numbers<[1], [0], [0], [1], [0, 0, 1, 1], [], []>} : vector<16x32xbf16>, vector<32x64xbf16>, vector<16x64xf32> -> vector<16x64xf32>
    %113 = vector.broadcast %3 : vector<1x64xf32> to vector<16x64xf32>
    %114 = arith.addf %112, %113 : vector<16x64xf32>
    %cst_24 = arith.constant 0.000000e+00 : f32
    %115 = vector.broadcast %cst_24 : f32 to vector<16x64xf32>
    %116 = arith.maximumf %114, %115 : vector<16x64xf32>
    %117 = arith.truncf %116 : vector<16x64xf32> to vector<16x64xbf16>
    %c0_25 = arith.constant 0 : index
    %c0_26 = arith.constant 0 : index
    %118 = vector.load %arg6[%c0_25, %c0_26] : memref<64x32xbf16, #tpu.memory_space<vmem>>, vector<64x32xbf16>
    %cst_27 = arith.constant dense<0.000000e+00> : vector<16x32xf32>
    %119 = tpu.matmul %117, %118, %cst_27 {dimension_numbers = #tpu.dot_dimension_numbers<[1], [0], [0], [1], [0, 0, 1, 1], [], []>} : vector<16x64xbf16>, vector<64x32xbf16>, vector<16x32xf32> -> vector<16x32xf32>
    %120 = vector.broadcast %4 : vector<1x32xf32> to vector<16x32xf32>
    %121 = arith.addf %119, %120 : vector<16x32xf32>
    %122 = arith.addf %110, %121 : vector<16x32xf32>
    %cst_28 = arith.constant dense<0.000000e+00> : vector<16xf32>
    %123 = vector.multi_reduction <add>, %122, %cst_28 [1] : vector<16x32xf32> to vector<16xf32>
    %124 = vector.shape_cast %123 : vector<16xf32> to vector<16x1xf32>
    %cst_29 = arith.constant 3.200000e+01 : f32
    %125 = vector.broadcast %cst_29 : f32 to vector<16x1xf32>
    %126 = arith.divf %124, %125 : vector<16x1xf32>
    %127 = vector.broadcast %126 : vector<16x1xf32> to vector<16x32xf32>
    %128 = arith.subf %122, %127 : vector<16x32xf32>
    %129 = arith.mulf %128, %128 : vector<16x32xf32>
    %cst_30 = arith.constant dense<0.000000e+00> : vector<16xf32>
    %130 = vector.multi_reduction <add>, %129, %cst_30 [1] : vector<16x32xf32> to vector<16xf32>
    %131 = vector.shape_cast %130 : vector<16xf32> to vector<16x1xf32>
    %cst_31 = arith.constant 3.200000e+01 : f32
    %132 = vector.broadcast %cst_31 : f32 to vector<16x1xf32>
    %133 = arith.divf %131, %132 : vector<16x1xf32>
    %134 = vector.broadcast %126 : vector<16x1xf32> to vector<16x32xf32>
    %135 = arith.subf %122, %134 : vector<16x32xf32>
    %cst_32 = arith.constant 9.99999974E-6 : f32
    %136 = vector.broadcast %cst_32 : f32 to vector<16x1xf32>
    %137 = arith.addf %133, %136 : vector<16x1xf32>
    %138 = math.rsqrt %137 : vector<16x1xf32>
    %139 = vector.broadcast %138 : vector<16x1xf32> to vector<16x32xf32>
    %140 = arith.mulf %135, %139 : vector<16x32xf32>
    %141 = vector.broadcast %7 : vector<1x32xf32> to vector<16x32xf32>
    %142 = arith.mulf %140, %141 : vector<16x32xf32>
    %143 = vector.broadcast %8 : vector<1x32xf32> to vector<16x32xf32>
    %144 = arith.addf %142, %143 : vector<16x32xf32>
    %c0_33 = arith.constant 0 : index
    %c0_34 = arith.constant 0 : index
    %145 = vector.load %arg8[%c0_33, %c0_34] : memref<16x32xf32, #tpu.memory_space<vmem>>, vector<16x32xf32>
    tpu.vector_store %arg8[%c0_33, %c0_34], %144 {strides = array<i32>} : memref<16x32xf32, #tpu.memory_space<vmem>>, vector<16x32xf32>,
    return
  }
  func.func @transform_0(%arg0: i32) -> (i32, i32) {
    %c0_i32 = arith.constant 0 : i32
    %c0_i32_0 = arith.constant 0 : i32
    %c0_i32_1 = arith.constant 0 : i32
    return %c0_i32, %c0_i32_0 : i32, i32
  }
  func.func @transform_1(%arg0: i32) -> (i32, i32) {
    %c0_i32 = arith.constant 0 : i32
    %c0_i32_0 = arith.constant 0 : i32
    %c0_i32_1 = arith.constant 0 : i32
    return %c0_i32, %c0_i32_0 : i32, i32
  }
  func.func @transform_2(%arg0: i32) -> (i32, i32) {
    %c0_i32 = arith.constant 0 : i32
    %c0_i32_0 = arith.constant 0 : i32
    %c0_i32_1 = arith.constant 0 : i32
    return %c0_i32, %c0_i32_0 : i32, i32
  }
  func.func @transform_3(%arg0: i32) -> (i32, i32, i32) {
    %c0_i32 = arith.constant 0 : i32
    %c0_i32_0 = arith.constant 0 : i32
    %c0_i32_1 = arith.constant 0 : i32
    %c0_i32_2 = arith.constant 0 : i32
    return %c0_i32, %c0_i32_0, %c0_i32_1 : i32, i32, i32
  }
  func.func @transform_4(%arg0: i32) -> (i32, i32) {
    %c0_i32 = arith.constant 0 : i32
    %c0_i32_0 = arith.constant 0 : i32
    %c0_i32_1 = arith.constant 0 : i32
    return %c0_i32, %c0_i32_0 : i32, i32
  }
  func.func @transform_5(%arg0: i32) -> (i32, i32) {
    %c0_i32 = arith.constant 0 : i32
    %c0_i32_0 = arith.constant 0 : i32
    %c0_i32_1 = arith.constant 0 : i32
    return %c0_i32, %c0_i32_0 : i32, i32
  }
  func.func @transform_6(%arg0: i32) -> (i32, i32) {
    %c0_i32 = arith.constant 0 : i32
    %c0_i32_0 = arith.constant 0 : i32
    %c0_i32_1 = arith.constant 0 : i32
    return %c0_i32, %c0_i32_0 : i32, i32
  }
  func.func @transform_7(%arg0: i32) -> (i32, i32) {
    %c0_i32 = arith.constant 0 : i32
    %c0_i32_0 = arith.constant 0 : i32
    %c0_i32_1 = arith.constant 0 : i32
    return %c0_i32, %c0_i32_0 : i32, i32
  }
}

</mosaic_0001>

<bundles_post_ra>
// kernel: tpu_custom_call.1
= control target key start
LH: loop header
LB: loop body
LE: loop exit
PB: predicated region body
PF: predicated region fallthrough
CT: control target
= control target key end

     0   :  { %12 = vsyncpa [#allocation3], 0  ;;  %s1878_s0 = inlined_call_operand.vmem [shape: f32[16,32], index: 0, kind: input, shape index: {}]   ;;  %s1879_s1 = inlined_call_operand.hbm [shape: f32[16,24], index: 1, kind: input, shape index: {}]   ;;  %s1880_s2 = inlined_call_operand.hbm [shape: bf16[32,96], index: 2, kind: input, shape index: {}]   ;;  %s1881_s3 = inlined_call_operand.vmem [shape: bf16[8,8,8], index: 3, kind: input, shape index: {}]   ;;  %s1882_s4 = inlined_call_operand.hbm [shape: bf16[32,192], index: 4, kind: input, shape index: {}]   ;;  %s1883_s5 = inlined_call_operand.vmem [shape: bf16[64,32], index: 5, kind: input, shape index: {}]   ;;  %s1884_s6 = inlined_call_operand.hbm [shape: f32[8,128], index: 6, kind: input, shape index: {}]   ;;  %s1885_s7 = inlined_call_operand.hbm [shape: f32[16,32], index: 7, kind: output, shape index: {}]  }
   0x1   :  { %13 = vsyncpa [#allocation6], 0 }
   0x2   :  { %14 = vsyncpa [#allocation9], 0 }
   0x3   :  { %15 = vsyncpa [#allocation4], 0  ;;  %s1521_s24 = smov [#allocation5]   ;;  %s1403_s28 = scalar_lea.hbm %s1880_s2, 256 }
   0x4   :  { %s35_s25 = sshll.u32 %s1521_s24, 4  ;;  %p1404_p0 = scmp.ne.s32.totalorder %s1880_s2, %s1403_s28  ;;  %s36_s25 = int_to_ptr.vmem [resolvable:$true] %s35_s25 }
   0x5   :  { %p1407_p1 = scmp.lt.u32.totalorder %s1403_s28, %s1880_s2 }
   0x7   :  { %p1409_p2 = pnand %p1407_p1, %p1404_p0 }
   0x9   :  { %1412 = shalt.err (!%p1409_p2)
}
   0xa   :  { %s1413_s10 = scalar_lea.vmem %s36_s25, 256  ;;  %p1418_p4 = scmp.lt.s32.totalorder %s36_s25, %s36_s25 }
   0xb   :  { %p1414_p3 = scmp.ne.s32.totalorder %s36_s25, %s1413_s10  ;;  %p1419_p5 = scmp.lt.s32.totalorder %s1413_s10, %s1413_s10 }
   0xd   :  { %p1420_p6 = por %p1419_p5, %p1418_p4 }
   0xf   :  { %p1421_p7 = pnand %p1420_p6, %p1414_p3 }
  0x11   :  { %1424 = shalt.err (!%p1421_p7)
}
  0x12   :  { %s1522_s11 = smov 64   ;;  %s1523_s12 = smov 4  }
  0x13   :  { %41 = dma.hbm_to_vmem [thread:$0]  %s1880_s2, 256, %s36_s25, [#allocation6], %s1522_s11, %s1522_s11, %s1523_s12  }
  0x14   :  { %s1524_s15 = smov [#allocation2]   ;;  %s1425_s19 = scalar_lea.hbm %s1879_s1, 256 }
  0x15   :  { %s23_s16 = sshll.u32 %s1524_s15, 4  ;;  %p1426_p8 = scmp.ne.s32.totalorder %s1879_s1, %s1425_s19  ;;  %s24_s16 = int_to_ptr.vmem [resolvable:$true] %s23_s16 }
  0x16   :  { %p1429_p9 = scmp.lt.u32.totalorder %s1425_s19, %s1879_s1 }
  0x18   :  { %p1431_p10 = pnand %p1429_p9, %p1426_p8 }
  0x1a   :  { %1434 = shalt.err (!%p1431_p10)
}
  0x1b   :  { %s1435_s24 = scalar_lea.vmem %s24_s16, 256  ;;  %p1440_p12 = scmp.lt.s32.totalorder %s24_s16, %s24_s16 }
  0x1c   :  { %p1436_p11 = scmp.ne.s32.totalorder %s24_s16, %s1435_s24  ;;  %p1441_p13 = scmp.lt.s32.totalorder %s1435_s24, %s1435_s24 }
  0x1e   :  { %p1442_p0 = por %p1441_p13, %p1440_p12 }
  0x20   :  { %p1443_p1 = pnand %p1442_p0, %p1436_p11 }
  0x22   :  { %1446 = shalt.err (!%p1443_p1)
}
  0x23   :  { %s1525_s2 = smov 128   ;;  %s1526_s25 = smov 8  }
  0x24   :  { %29 = dma.hbm_to_vmem [thread:$0]  %s1879_s1, 256, %s24_s16, [#allocation3], %s1525_s2, %s1525_s2, %s1526_s25  }
  0x25   :  { %s1527_s28 = smov [#allocation7]   ;;  %s1528_s30 = smov [#allocation8]  }
  0x26   :  { %s49_s29 = sshll.u32 %s1527_s28, 4  ;;  %s64_s8 = sshll.u32 %s1528_s30, 4  ;;  %s50_s29 = int_to_ptr.vmem [resolvable:$true] %s49_s29  ;;  %s65_s8 = int_to_ptr.vmem [resolvable:$true] %s64_s8 }
  0x27   :  { %s1447_s12 = scalar_lea.hbm %s1882_s4, 512 }
  0x28   :  { %p1448_p2 = scmp.ne.s32.totalorder %s1882_s4, %s1447_s12  ;;  %p1451_p3 = scmp.lt.u32.totalorder %s1447_s12, %s1882_s4 }
  0x2a   :  { %p1453_p4 = pnand %p1451_p3, %p1448_p2 }
  0x2c   :  { %1456 = shalt.err (!%p1453_p4)
}
  0x2d   :  { %s1457_s1 = scalar_lea.vmem %s50_s29, 512  ;;  %p1462_p6 = scmp.lt.s32.totalorder %s50_s29, %s50_s29 }
  0x2e   :  { %p1458_p5 = scmp.ne.s32.totalorder %s50_s29, %s1457_s1  ;;  %p1463_p7 = scmp.lt.s32.totalorder %s1457_s1, %s1457_s1 }
  0x30   :  { %p1464_p8 = por %p1463_p7, %p1462_p6 }
  0x32   :  { %p1465_p9 = pnand %p1464_p8, %p1458_p5 }
  0x34   :  { %1468 = shalt.err (!%p1465_p9)
}
  0x35   :  { %55 = dma.hbm_to_vmem [thread:$0]  %s1882_s4, 512, %s50_s29, [#allocation6], %s1525_s2, %s1525_s2, %s1526_s25  }
  0x36   :  { %s1469_s21 = scalar_lea.hbm %s1884_s6, 128 }
  0x37   :  { %p1470_p10 = scmp.ne.s32.totalorder %s1884_s6, %s1469_s21  ;;  %p1473_p11 = scmp.lt.u32.totalorder %s1469_s21, %s1884_s6 }
  0x39   :  { %p1475_p12 = pnand %p1473_p11, %p1470_p10 }
  0x3b   :  { %1478 = shalt.err (!%p1475_p12)
}
  0x3c   :  { %s1479_s27 = scalar_lea.vmem %s65_s8, 128  ;;  %p1484_p0 = scmp.lt.s32.totalorder %s65_s8, %s65_s8 }
  0x3d   :  { %p1480_p13 = scmp.ne.s32.totalorder %s65_s8, %s1479_s27  ;;  %p1485_p1 = scmp.lt.s32.totalorder %s1479_s27, %s1479_s27 }
  0x3f   :  { %p1486_p2 = por %p1485_p1, %p1484_p0 }
  0x41   :  { %p1487_p3 = pnand %p1486_p2, %p1480_p13 }
  0x43   :  { %1490 = shalt.err (!%p1487_p3)
}
  0x44   :  { %67 = dma.hbm_to_vmem [thread:$0]  %s1884_s6, 128, %s65_s8, [#allocation9]  }
  0x45   :  { %1513 = dma.done.wait [#allocation3], 256  }
  0x46   :  { %1514 = vsyncadd [#allocation3], 4294967040 }
  0x47   :  { %1515 = dma.done.wait [#allocation6], 768  }
  0x48   :  { %1516 = vsyncadd [#allocation6], 4294966528 }
  0x49   :  { %1517 = dma.done.wait [#allocation9], 128  }
  0x4a   :  { %1518 = vsyncadd [#allocation9], 4294967168  ;;  %v1529_v0 = vmov 0.0   ;;  %vm1530_vm0 = vmmov 0   ;;  %v1343_v1 = vld [vmem:[#allocation5] sm:$0xff]   ;;  %v1344_v2 = vld [vmem:[#allocation5 + $0x8] sm:$0xff]   ;;  %v89_v7 = vlaneseq }
  0x4b   :  { %1180 = vmatprep.subr.bf16.mxu0 %v1529_v0  ;;  %1184 = vmatprep.mubr.msk.bf16.mxu0 %vm1530_vm0, %v1529_v0  ;;  %v1644_v3 = vld [vmem:[%s1878_s0] sm:$0xff]  ;;  %v1649_v4 = vld [vmem:[%s1878_s0 + $0x8] sm:$0xff]  ;;  %vm105_vm1 = vcmask 261120   ;;  %s1531_s0 = smov 32   ;;  %s1532_s12 = smov 112   ;;  %vm255_vm2 = vcmask 64512  }
  0x4c   :  { %1188 = vmatprep.subr.bf16.mxu1 %v1529_v0  ;;  %1192 = vmatprep.mubr.msk.bf16.mxu1 %vm1530_vm0, %v1529_v0  ;;  %v84_v5 = vpack.c.bf16 %v1649_v4, %v1644_v3  ;;  %v1345_v6 = vld [vmem:[%s1881_s3 + $0x4] ss:$0 sps:$4 sm:$0xff]   ;;  %v1662_v8 = vshrl.u32 %v89_v7, 7  ;;  %s1533_s13 = smov 120   ;;  %v1346_v22 = vld [vmem:[%s1881_s3 + $0x8] ss:$0 sps:$4 sm:$0xff]  }
  0x4d   :  { %1181 = vmatpush3.bf16.msra.mxu0 %v1343_v1  ;;  %222 = vrot.lane.b32.xlu1 %v1345_v6, %s1531_s0  ;;  %v1665_v10 = vld [vmem:[#allocation8] sm:$0xff]  ;;  %s1534_s16 = smov 104   ;;  %s1535_s18 = smov 96   ;;  %v1348_v26 = vld [vmem:[%s1881_s3 + $0xc] ss:$0 sps:$4 sm:$0xff]   ;;  %vm564_vm3 = vcmask 1043456  }
  0x4e   :  { %1182 = vmatprep.subr.bf16.mxu0 %v1529_v0  ;;  %v91_v9 = vsub.s32 0, %v1662_v8  ;;  %v1347_v23 = vld [vmem:[%s1881_s3] ss:$0 sps:$4 sm:$0xff]   ;;  %v1349_v45 = vld [vmem:[%s1881_s3 + $0x10] ss:$0 sps:$4 sm:$0xff]   ;;  %vm471_vm4 = vcmask 195584  }
  0x4f   :  { %v1350_v46 = vld [vmem:[%s1881_s3 + $0x14] ss:$0 sps:$4 sm:$0xff]   ;;  %v1351_v47 = vld [vmem:[%s1881_s3 + $0x18] ss:$0 sps:$4 sm:$0xff]   ;;  %v1352_v48 = vld [vmem:[%s1881_s3 + $0x1c] ss:$0 sps:$4 sm:$0xff]  }
  0x50   :  { %v92_v11 = vrot.slane %v1665_v10, %v91_v9  ;;  %s1536_s3 = smov 16   ;;  %vm799_vm5 = vcmask 130048   ;;  %vm1006_vm6 = vcmask 523264  }
  0x51   :  { %1183 = vmatpush3.bf16.msra.mxu0 %v1344_v2 }
  0x52   :  { %1196 = vmatprep.subr.bf16.mxu0 %v1529_v0 }
  0x54   :  { %1185 = vmatmul.mubr.msk.bf16.vlgmr.msra.gmra.mrb[0].mxu0 %vm105_vm1, %v84_v5 }
  0x55   :  { %1200 = vmatprep.mubr.msk.bf16.mxu0 %vm1530_vm0, %v1529_v0 }
  0xbf   :  { %v223_v27 = vpop.permute.xlu1 %222 }
 0x127   :  { %v143_v12 = vpop.f32.mrb[0].mxu0 }
 0x128   :  { %v1186_v13 = vpop.f32.mrb[1].mxu0  ;;  %v144_v14 = vadd.f32 %v143_v12, %v92_v11 }
 0x129   :  { %v146_v15 = vpop.f32.mrb[2].mxu0 }
 0x12a   :  { %v147_v16 = vadd.f32 %v146_v15, %v92_v11  ;;  %v1187_v17 = vpop.f32.mrb[3].mxu0  ;;  %v1668_v20 = vmul.f32 0.35355338, %v144_v14 }
 0x12c   :  { %v1303_v18 = vpack.i.bf16 %v147_v16, %v144_v14  ;;  %v196_v19 = vpack.c.bf16 %v147_v16, %v144_v14  ;;  %v1670_v21 = vmul.f32 0.35355338, %v147_v16 }
 0x12e   :  { %1304 = vrot.lane.b32.xlu1 %v1303_v18, %s1532_s12  ;;  %1299 = vrot.lane.b32.xlu0 %v1303_v18, %s1533_s13  ;;  %v1313_v24 = vpack.i.bf16 %v1670_v21, %v1668_v20  ;;  %v172_v25 = vpack.c.bf16 %v1670_v21, %v1668_v20 }
 0x132   :  { %224 = vrot.lane.b32.xlu1 %v1346_v22, %s1531_s0  ;;  %220 = vrot.lane.b32.xlu0 %v1347_v23, %s1531_s0 }
 0x136   :  { %1309 = vrot.lane.b32.xlu0 %v1303_v18, %s1534_s16  ;;  %251 = vrot.lane.b32.xlu1 %v196_v19, %s1535_s18 }
 0x13a   :  { %226 = vrot.lane.b32.xlu0 %v1348_v26, %s1531_s0  ;;  %v248_v26 = vld [vmem:[#allocation2] sm:$0xff] }
 0x1a0   :  { %v1305_v28 = vpop.permute.xlu1 %1304  ;;  %v1300_v29 = vpop.permute.xlu0 %1299 }
 0x1a1   :  { %v1302_v30 = vunpack.i.h.bf16 %v1300_v29  ;;  %v1301_v31 = vunpack.i.l.bf16 %v1300_v29  ;;  %v1307_v35 = vunpack.i.h.bf16 %v1305_v28  ;;  %v1306_v36 = vunpack.i.l.bf16 %v1305_v28  ;;  %v249_v28 = vld [vmem:[#allocation2 + $0x8] sm:$0xff] }
 0x1a3   :  { %v197_v32 = vpack.c.bf16 %v1302_v30, %v1301_v31  ;;  %v198_v42 = vpack.c.bf16 %v1307_v35, %v1306_v36 }
 0x1a4   :  { %v225_v33 = vpop.permute.xlu1 %224  ;;  %v221_v34 = vpop.permute.xlu0 %220 }
 0x1a5   :  { %307 = vrot.lane.b32.xlu0 %v197_v32, %s1535_s18  ;;  %253 = vrot.lane.b32.xlu1 %v221_v34, %s1535_s18 }
 0x1a8   :  { %v1310_v37 = vpop.permute.xlu0 %1309  ;;  %v252_v38 = vpop.permute.xlu1 %251 }
 0x1a9   :  { %v1312_v39 = vunpack.i.h.bf16 %v1310_v37  ;;  %v1311_v40 = vunpack.i.l.bf16 %v1310_v37  ;;  %309 = vrot.lane.b32.xlu0 %v223_v27, %s1535_s18  ;;  %1314 = vrot.lane.b32.xlu1 %v1313_v24, %s1533_s13  ;;  %v260_v41 = vsel %vm255_vm2, %v252_v38, 0 }
 0x1aa   :  { %1189 = vmatpush3.bf16.xpose.msra.mxu1 %v260_v41 }
 0x1ab   :  { %v1697_v43 = vpack.c.bf16 %v1312_v39, %v1311_v40  ;;  %1190 = vmatprep.subr.bf16.mxu1 %v1529_v0 }
 0x1ac   :  { %v227_v44 = vpop.permute.xlu0 %226 }
 0x1ad   :  { %362 = vrot.lane.b32.xlu0 %v198_v42, %s1535_s18  ;;  %417 = vrot.lane.b32.xlu1 %v1697_v43, %s1535_s18 }
 0x1b1   :  { %364 = vrot.lane.b32.xlu0 %v225_v33, %s1535_s18  ;;  %419 = vrot.lane.b32.xlu1 %v227_v44, %s1535_s18 }
 0x1b5   :  { %1319 = vrot.lane.b32.xlu0 %v1313_v24, %s1532_s12  ;;  %1324 = vrot.lane.b32.xlu1 %v1313_v24, %s1534_s16 }
 0x1b9   :  { %240 = vrot.lane.b32.xlu0 %v1349_v45, %s1522_s11  ;;  %242 = vrot.lane.b32.xlu1 %v1350_v46, %s1522_s11 }
 0x1bd   :  { %244 = vrot.lane.b32.xlu0 %v1351_v47, %s1522_s11  ;;  %246 = vrot.lane.b32.xlu1 %v1352_v48, %s1522_s11 }
 0x1c1   :  { %609 = vrot.lane.b32.xlu0 %v197_v32, %s1522_s11  ;;  %556 = vrot.lane.b32.xlu1 %v196_v19, %s1522_s11 }
 0x1c5   :  { %661 = vrot.lane.b32.xlu0 %v198_v42, %s1522_s11 }
 0x217   :  { %v308_v49 = vpop.permute.xlu0 %307  ;;  %v254_v50 = vpop.permute.xlu1 %253 }
 0x218   :  { %v315_v51 = vsel %vm255_vm2, %v308_v49, 0  ;;  %v263_v52 = vsel %vm255_vm2, %v254_v50, 0 }
 0x219   :  { %1191 = vmatpush3.bf16.xpose.msra.mxu1 %v263_v52  ;;  %1197 = vmatpush3.bf16.xpose.msra.mxu0 %v315_v51 }
 0x21a   :  { %1198 = vmatprep.subr.bf16.mxu0 %v1529_v0  ;;  %1204 = vmatprep.subr.bf16.mxu1 %v1529_v0 }
 0x21b   :  { %v310_v53 = vpop.permute.xlu0 %309  ;;  %v1315_v54 = vpop.permute.xlu1 %1314 }
 0x21c   :  { %v318_v57 = vsel %vm255_vm2, %v310_v53, 0  ;;  %v1317_v59 = vunpack.i.h.bf16 %v1315_v54  ;;  %v1316_v60 = vunpack.i.l.bf16 %v1315_v54 }
 0x21e   :  { %v173_v63 = vpack.c.bf16 %v1317_v59, %v1316_v60 }
 0x21f   :  { %v363_v55 = vpop.permute.xlu0 %362  ;;  %v418_v56 = vpop.permute.xlu1 %417 }
 0x220   :  { %v370_v58 = vsel %vm255_vm2, %v363_v55, 0  ;;  %1193 = vmatmul.mubr.msk.bf16.vlgmr.msra.gmra.mrb[0].mxu1 %vm255_vm2, %v172_v25  ;;  %v425_v6 = vsel %vm255_vm2, %v418_v56, 0 }
 0x221   :  { %1199 = vmatpush3.bf16.xpose.msra.mxu0 %v318_v57  ;;  %1205 = vmatpush3.bf16.xpose.msra.mxu1 %v370_v58 }
 0x222   :  { %1206 = vmatprep.subr.bf16.mxu1 %v1529_v0  ;;  %1212 = vmatprep.subr.bf16.mxu0 %v1529_v0 }
 0x223   :  { %v365_v61 = vpop.permute.xlu0 %364  ;;  %v420_v62 = vpop.permute.xlu1 %419  ;;  %1208 = vmatprep.mubr.msk.bf16.mxu1 %vm1530_vm0, %v1529_v0 }
 0x224   :  { %v373_v1 = vsel %vm255_vm2, %v365_v61, 0  ;;  %v428_v13 = vsel %vm255_vm2, %v420_v62, 0 }
 0x227   :  { %v1320_v2 = vpop.permute.xlu0 %1319  ;;  %v1325_v5 = vpop.permute.xlu1 %1324 }
 0x228   :  { %1201 = vmatmul.mubr.msk.bf16.vlgmr.msra.gmra.mrb[4].mxu0 %vm255_vm2, %v173_v63  ;;  %v1322_v7 = vunpack.i.h.bf16 %v1320_v2  ;;  %v1321_v9 = vunpack.i.l.bf16 %v1320_v2  ;;  %v1327_v16 = vunpack.i.h.bf16 %v1325_v5  ;;  %v1326_v17 = vunpack.i.l.bf16 %v1325_v5 }
 0x229   :  { %1207 = vmatpush3.bf16.xpose.msra.mxu1 %v373_v1  ;;  %1213 = vmatpush3.bf16.xpose.msra.mxu0 %v425_v6 }
 0x22a   :  { %1214 = vmatprep.subr.bf16.mxu0 %v1529_v0  ;;  %1220 = vmatprep.subr.bf16.mxu1 %v1529_v0  ;;  %v174_v14 = vpack.c.bf16 %v1322_v7, %v1321_v9  ;;  %v175_v20 = vpack.c.bf16 %v1327_v16, %v1326_v17 }
 0x22b   :  { %v241_v11 = vpop.permute.xlu0 %240  ;;  %v243_v12 = vpop.permute.xlu1 %242  ;;  %1216 = vmatprep.mubr.msk.bf16.mxu0 %vm1530_vm0, %v1529_v0 }
 0x22c   :  { %558 = vrot.lane.b32.xlu1 %v241_v11, %s1522_s11 }
 0x22f   :  { %v1749_v15 = vpop.permute.xlu1 %246  ;;  %v1755_v18 = vpop.permute.xlu0 %244 }
 0x230   :  { %611 = vrot.lane.b32.xlu1 %v243_v12, %s1522_s11  ;;  %1209 = vmatmul.mubr.msk.bf16.vlgmr.msra.gmra.mrb[4].mxu1 %vm255_vm2, %v174_v14 }
 0x231   :  { %1215 = vmatpush3.bf16.xpose.msra.mxu0 %v428_v13  ;;  %1224 = vmatprep.mubr.msk.bf16.mxu1 %vm1530_vm0, %v1529_v0 }
 0x232   :  { %1228 = vmatprep.subr.bf16.mxu0 %v1529_v0 }
 0x233   :  { %v557_v19 = vpop.permute.xlu1 %556  ;;  %v610_v21 = vpop.permute.xlu0 %609 }
 0x234   :  { %713 = vrot.lane.b32.xlu1 %v1697_v43, %s1522_s11  ;;  %1221 = vmatpush3.bf16.msra.mxu1 %v557_v19 }
 0x235   :  { %1222 = vmatprep.subr.bf16.mxu1 %v1529_v0 }
 0x237   :  { %v662_v60 = vpop.permute.xlu0 %661 }
 0x238   :  { %1217 = vmatmul.mubr.msk.bf16.vlgmr.msra.gmra.mrb[8].mxu0 %vm255_vm2, %v175_v20 }
 0x239   :  { %1229 = vmatpush3.bf16.msra.mxu0 %v610_v21  ;;  %1232 = vmatprep.mubr.msk.bf16.mxu0 %vm1530_vm0, %v1529_v0 }
 0x23a   :  { %1230 = vmatprep.subr.bf16.mxu0 %v1529_v0 }
 0x29e   :  { %v559_v22 = vpop.permute.xlu1 %558 }
 0x29f   :  { %v566_v23 = vsel %vm564_vm3, %v559_v22, 0 }
 0x2a0   :  { %1223 = vmatpush3.bf16.msra.mxu1 %v566_v23 }
 0x2a1   :  { %1236 = vmatprep.subr.bf16.mxu1 %v1529_v0 }
 0x2a2   :  { %v612_v24 = vpop.permute.xlu1 %611 }
 0x2a3   :  { %v618_v25 = vsel %vm564_vm3, %v612_v24, 0 }
 0x2a4   :  { %1231 = vmatpush3.bf16.msra.mxu0 %v618_v25 }
 0x2a5   :  { %1244 = vmatprep.subr.bf16.mxu0 %v1529_v0 }
 0x2a6   :  { %v714_v61 = vpop.permute.xlu1 %713 }
 0x2f3   :  { %v299_v27 = vpop.f32.mrb[0].mxu1 }
 0x2f4   :  { %v300_v29 = vadd.f32 %v299_v27, %v248_v26  ;;  %v1194_v30 = vpop.f32.mrb[1].mxu1 }
 0x2f5   :  { %v302_v31 = vpop.f32.mrb[2].mxu1 }
 0x2f6   :  { %v303_v32 = vadd.f32 %v302_v31, %v249_v28  ;;  %v1195_v33 = vpop.f32.mrb[3].mxu1  ;;  %v472_v34 = vsel %vm471_vm4, %v300_v29, -inf }
 0x2f7   :  { %473 = vmax.xlane.f32.xlu0 %v472_v34 }
 0x2f8   :  { %v475_v35 = vsel %vm471_vm4, %v303_v32, -inf }
 0x2f9   :  { %476 = vmax.xlane.f32.xlu1 %v475_v35 }
 0x2fb   :  { %v354_v36 = vpop.f32.mrb[4].mxu0 }
 0x2fc   :  { %v355_v37 = vadd.f32 %v354_v36, %v248_v26  ;;  %v1202_v38 = vpop.f32.mrb[5].mxu0 }
 0x2fd   :  { %v357_v39 = vpop.f32.mrb[6].mxu0 }
 0x2fe   :  { %v358_v40 = vadd.f32 %v357_v39, %v249_v28  ;;  %v1203_v41 = vpop.f32.mrb[7].mxu0  ;;  %v478_v42 = vsel %vm471_vm4, %v355_v37, -inf }
 0x2ff   :  { %479 = vmax.xlane.f32.xlu0 %v478_v42 }
 0x300   :  { %v481_v43 = vsel %vm471_vm4, %v358_v40, -inf }
 0x303   :  { %482 = vmax.xlane.f32.xlu0 %v481_v43  ;;  %v409_v44 = vpop.f32.mrb[4].mxu1 }
 0x304   :  { %v410_v45 = vadd.f32 %v409_v44, %v248_v26  ;;  %v1210_v46 = vpop.f32.mrb[5].mxu1 }
 0x305   :  { %v412_v47 = vpop.f32.mrb[6].mxu1 }
 0x306   :  { %v413_v48 = vadd.f32 %v412_v47, %v249_v28  ;;  %v1211_v49 = vpop.f32.mrb[7].mxu1  ;;  %v484_v50 = vsel %vm471_vm4, %v410_v45, -inf }
 0x307   :  { %485 = vmax.xlane.f32.xlu1 %v484_v50 }
 0x308   :  { %v487_v51 = vsel %vm471_vm4, %v413_v48, -inf }
 0x309   :  { %488 = vmax.xlane.f32.xlu0 %v487_v51 }
 0x30b   :  { %v464_v52 = vpop.f32.mrb[8].mxu0 }
 0x30c   :  { %v465_v53 = vadd.f32 %v464_v52, %v248_v26  ;;  %v1218_v54 = vpop.f32.mrb[9].mxu0 }
 0x30d   :  { %v467_v55 = vpop.f32.mrb[10].mxu0 }
 0x30e   :  { %v468_v56 = vadd.f32 %v467_v55, %v249_v28  ;;  %v1219_v57 = vpop.f32.mrb[11].mxu0  ;;  %v490_v58 = vsel %vm471_vm4, %v465_v53, -inf }
 0x30f   :  { %491 = vmax.xlane.f32.xlu1 %v490_v58 }
 0x310   :  { %v493_v59 = vsel %vm471_vm4, %v468_v56, -inf }
 0x311   :  { %494 = vmax.xlane.f32.xlu0 %v493_v59 }
 0x320   :  { %715 = vrot.lane.b32.xlu1 %v1749_v15, %s1522_s11 }
 0x327   :  { %663 = vrot.lane.b32.xlu0 %v1755_v18, %s1522_s11  ;;  %s1537_s11 = smov 24  }
 0x384   :  { %v474_v62 = vpop.xlane.xlu0 %473 }
 0x385   :  { %v496_v63 = vsub.f32 %v300_v29, %v474_v62 }
 0x386   :  { %v477_v1 = vpop.xlane.xlu1 %476 }
 0x387   :  { %v504_v2 = vmul.f32 1.442695, %v496_v63  ;;  %v497_v5 = vsub.f32 %v303_v32, %v477_v1 }
 0x389   :  { %v506_v6 = vmul.f32 1.442695, %v497_v5  ;;  %1363 = vpow2.f32 %v504_v2  ;;  %v1353_v2 = vld [vmem:[#allocation7] ss:$8 sps:$4 sm:$0xff]  }
 0x38b   :  { %1365 = vpow2.f32 %v506_v6 }
 0x38c   :  { %v480_v7 = vpop.xlane.xlu0 %479 }
 0x38d   :  { %v498_v9 = vsub.f32 %v355_v37, %v480_v7 }
 0x38f   :  { %v508_v11 = vmul.f32 1.442695, %v498_v9 }
 0x390   :  { %v483_v12 = vpop.xlane.xlu0 %482 }
 0x391   :  { %1367 = vpow2.f32 %v508_v11  ;;  %v499_v13 = vsub.f32 %v358_v40, %v483_v12 }
 0x393   :  { %v510_v14 = vmul.f32 1.442695, %v499_v13  ;;  %v1364_v15 = vpop.eup %1363 }
 0x394   :  { %v486_v16 = vpop.xlane.xlu1 %485  ;;  %v520_v49 = vsel %vm471_vm4, %v1364_v15, 0.0 }
 0x395   :  { %v1366_v17 = vpop.eup %1365  ;;  %1369 = vpow2.f32 %v510_v14  ;;  %v500_v18 = vsub.f32 %v410_v45, %v486_v16 }
 0x396   :  { %v489_v19 = vpop.xlane.xlu0 %488  ;;  %v552_v20 = vpack.c.bf16 %v1366_v17, %v1364_v15  ;;  %v523_v50 = vsel %vm471_vm4, %v1366_v17, 0.0 }
 0x397   :  { %v512_v21 = vmul.f32 1.442695, %v500_v18  ;;  %v501_v22 = vsub.f32 %v413_v48, %v489_v19 }
 0x398   :  { %1225 = vmatmul.mubr.msk.bf16.vlgmr.msra.gmra.mrb[8].mxu1 %vm471_vm4, %v552_v20  ;;  %v1355_v20 = vld [vmem:[#allocation7 + $0x10] ss:$8 sps:$4 sm:$0xff]  }
 0x399   :  { %1371 = vpow2.f32 %v512_v21  ;;  %v514_v23 = vmul.f32 1.442695, %v501_v22  ;;  %1237 = vmatpush3.bf16.msra.mxu1 %v662_v60  ;;  %1240 = vmatprep.mubr.msk.bf16.mxu1 %vm1530_vm0, %v1529_v0 }
 0x39a   :  { %1238 = vmatprep.subr.bf16.mxu1 %v1529_v0 }
 0x39b   :  { %v1368_v24 = vpop.eup %1367  ;;  %1373 = vpow2.f32 %v514_v23 }
 0x39c   :  { %v492_v25 = vpop.xlane.xlu1 %491  ;;  %v526_v26 = vsel %vm471_vm4, %v1368_v24, 0.0 }
 0x39d   :  { %v502_v27 = vsub.f32 %v465_v53, %v492_v25  ;;  %527 = vadd.xlane.f32.xlu0 %v526_v26 }
 0x39e   :  { %v495_v28 = vpop.xlane.xlu0 %494 }
 0x39f   :  { %v1370_v29 = vpop.eup %1369  ;;  %v516_v30 = vmul.f32 1.442695, %v502_v27  ;;  %v503_v31 = vsub.f32 %v468_v56, %v495_v28 }
 0x3a0   :  { %v529_v32 = vsel %vm471_vm4, %v1370_v29, 0.0  ;;  %v553_v33 = vpack.c.bf16 %v1370_v29, %v1368_v24  ;;  %v716_v35 = vpop.permute.xlu1 %715 }
 0x3a1   :  { %1375 = vpow2.f32 %v516_v30  ;;  %v518_v34 = vmul.f32 1.442695, %v503_v31  ;;  %530 = vadd.xlane.f32.xlu1 %v529_v32  ;;  %v722_v40 = vsel %vm564_vm3, %v716_v35, 0 }
 0x3a2   :  { %1233 = vmatmul.mubr.msk.bf16.vlgmr.msra.gmra.mrb[12].mxu0 %vm471_vm4, %v553_v33  ;;  %v664_v36 = vpop.permute.xlu0 %663 }
 0x3a3   :  { %v1372_v37 = vpop.eup %1371  ;;  %1377 = vpow2.f32 %v518_v34  ;;  %1245 = vmatpush3.bf16.msra.mxu0 %v714_v61  ;;  %v670_v38 = vsel %vm564_vm3, %v664_v36, 0  ;;  %1248 = vmatprep.mubr.msk.bf16.mxu0 %vm1530_vm0, %v1529_v0 }
 0x3a4   :  { %v532_v39 = vsel %vm471_vm4, %v1372_v37, 0.0  ;;  %1239 = vmatpush3.bf16.msra.mxu1 %v670_v38  ;;  %1246 = vmatprep.subr.bf16.mxu0 %v1529_v0 }
 0x3a5   :  { %v1374_v41 = vpop.eup %1373  ;;  %533 = vadd.xlane.f32.xlu0 %v532_v39  ;;  %1252 = vmatprep.subr.bf16.mxu1 %v1529_v0 }
 0x3a6   :  { %v554_v42 = vpack.c.bf16 %v1374_v41, %v1372_v37  ;;  %v535_v43 = vsel %vm471_vm4, %v1374_v41, 0.0 }
 0x3a7   :  { %1247 = vmatpush3.bf16.msra.mxu0 %v722_v40 }
 0x3a8   :  { %1241 = vmatmul.mubr.msk.bf16.vlgmr.msra.gmra.mrb[12].mxu1 %vm471_vm4, %v554_v42  ;;  %1260 = vmatprep.subr.bf16.mxu0 %v1529_v0 }
 0x3a9   :  { %536 = vadd.xlane.f32.xlu0 %v535_v43  ;;  %1256 = vmatprep.mubr.msk.bf16.mxu1 %vm1530_vm0, %v1529_v0 }
 0x3aa   :  { %1253 = vmatpush3.bf16.msra.mxu1 %v1353_v2 }
 0x3ab   :  { %v1376_v44 = vpop.eup %1375  ;;  %1254 = vmatprep.subr.bf16.mxu1 %v1529_v0 }
 0x3ac   :  { %v538_v45 = vsel %vm471_vm4, %v1376_v44, 0.0 }
 0x3ad   :  { %v1378_v46 = vpop.eup %1377  ;;  %539 = vadd.xlane.f32.xlu1 %v538_v45 }
 0x3ae   :  { %v541_v47 = vsel %vm471_vm4, %v1378_v46, 0.0  ;;  %v555_v48 = vpack.c.bf16 %v1378_v46, %v1376_v44  ;;  %1255 = vmatpush3.bf16.msra.mxu1 %v1355_v20 }
 0x3af   :  { %542 = vadd.xlane.f32.xlu0 %v541_v47  ;;  %1268 = vmatprep.subr.bf16.mxu1 %v1529_v0 }
 0x3b0   :  { %1249 = vmatmul.mubr.msk.bf16.vlgmr.msra.gmra.mrb[16].mxu0 %vm471_vm4, %v555_v48 }
 0x3b1   :  { %521 = vadd.xlane.f32.xlu1 %v520_v49  ;;  %1264 = vmatprep.mubr.msk.bf16.mxu0 %vm1530_vm0, %v1529_v0 }
 0x3b3   :  { %524 = vadd.xlane.f32.xlu0 %v523_v50 }
 0x42a   :  { %v528_v51 = vpop.xlane.xlu0 %527 }
 0x42b   :  { %1379 = vrcp.f32 %v528_v51 }
 0x42e   :  { %v531_v52 = vpop.xlane.xlu1 %530 }
 0x42f   :  { %1381 = vrcp.f32 %v531_v52 }
 0x432   :  { %v534_v53 = vpop.xlane.xlu0 %533 }
 0x433   :  { %1383 = vrcp.f32 %v534_v53  ;;  %v811_v53 = vsub.s32 1, %v1662_v8 }
 0x435   :  { %v1380_v60 = vpop.eup %1379 }
 0x436   :  { %v537_v58 = vpop.xlane.xlu0 %536 }
 0x437   :  { %1385 = vrcp.f32 %v537_v58 }
 0x439   :  { %v1382_v62 = vpop.eup %1381 }
 0x43a   :  { %v540_v63 = vpop.xlane.xlu1 %539 }
 0x43b   :  { %1387 = vrcp.f32 %v540_v63 }
 0x43c   :  { %v543_v5 = vpop.xlane.xlu0 %542 }
 0x43d   :  { %1389 = vrcp.f32 %v543_v5  ;;  %v1384_v13 = vpop.eup %1383 }
 0x43e   :  { %v522_v31 = vpop.xlane.xlu1 %521 }
 0x43f   :  { %1391 = vrcp.f32 %v522_v31 }
 0x440   :  { %v525_v32 = vpop.xlane.xlu0 %524 }
 0x441   :  { %v1386_v15 = vpop.eup %1385  ;;  %1393 = vrcp.f32 %v525_v32 }
 0x445   :  { %v1388_v23 = vpop.eup %1387 }
 0x447   :  { %v1390_v25 = vpop.eup %1389 }
 0x449   :  { %v1392_v35 = vpop.eup %1391 }
 0x44b   :  { %v1394_v38 = vpop.eup %1393 }
 0x46b   :  { %v1807_v54 = vpop.f32.mrb[8].mxu1 }
 0x46c   :  { %v1226_v55 = vpop.f32.mrb[9].mxu1  ;;  %v765_v41 = vmul.f32 %v1392_v35, %v1807_v54  ;;  %v812_v54 = vrot.slane %v1665_v10, %v811_v53 }
 0x46d   :  { %v605_v56 = vpop.f32.mrb[10].mxu1 }
 0x46e   :  { %v1227_v57 = vpop.f32.mrb[11].mxu1  ;;  %v766_v42 = vmul.f32 %v1394_v38, %v605_v56  ;;  %v1362_v38 = vld [vmem:[%s1883_s5 + $0x18] sm:$0xff]  }
 0x475   :  { %v654_v59 = vpop.f32.mrb[12].mxu0 }
 0x476   :  { %v1234_v61 = vpop.f32.mrb[13].mxu0  ;;  %v767_v6 = vmul.f32 %v1380_v60, %v654_v59 }
 0x477   :  { %v657_v1 = vpop.f32.mrb[14].mxu0 }
 0x478   :  { %v768_v7 = vmul.f32 %v1382_v62, %v657_v1  ;;  %v1235_v9 = vpop.f32.mrb[15].mxu0 }
 0x47a   :  { %v1328_v11 = vpack.i.bf16 %v768_v7, %v767_v6 }
 0x47b   :  { %v706_v12 = vpop.f32.mrb[12].mxu1 }
 0x47c   :  { %1329 = vrot.lane.b32.xlu1 %v1328_v11, %s1526_s25  ;;  %v1242_v14 = vpop.f32.mrb[13].mxu1  ;;  %v769_v17 = vmul.f32 %v1384_v13, %v706_v12 }
 0x47d   :  { %v709_v16 = vpop.f32.mrb[14].mxu1 }
 0x47e   :  { %v770_v18 = vmul.f32 %v1386_v15, %v709_v16  ;;  %v1243_v19 = vpop.f32.mrb[15].mxu1  ;;  %v1357_v15 = vld [vmem:[#allocation7 + $0x4] ss:$8 sps:$4 sm:$0xff]  }
 0x47f   :  { %1261 = vmatpush3.bf16.msra.mxu0 %v1357_v15  ;;  %v1359_v16 = vld [vmem:[%s1883_s5] sm:$0xff]  }
 0x480   :  { %v1333_v21 = vpack.i.bf16 %v770_v18, %v769_v17  ;;  %1262 = vmatprep.subr.bf16.mxu0 %v1529_v0  ;;  %v1360_v17 = vld [vmem:[%s1883_s5 + $0x8] sm:$0xff]  }
 0x482   :  { %1334 = vrot.lane.b32.xlu0 %v1333_v21, %s1536_s3 }
 0x483   :  { %v758_v22 = vpop.f32.mrb[16].mxu0 }
 0x484   :  { %v1250_v24 = vpop.f32.mrb[17].mxu0  ;;  %v771_v27 = vmul.f32 %v1388_v23, %v758_v22 }
 0x485   :  { %v761_v26 = vpop.f32.mrb[18].mxu0  ;;  %v900_v24 = vsub.s32 4, %v1662_v8 }
 0x486   :  { %v772_v28 = vmul.f32 %v1390_v25, %v761_v26  ;;  %v1251_v29 = vpop.f32.mrb[19].mxu0  ;;  %v906_v26 = vsub.s32 5, %v1662_v8 }
 0x487   :  { %v901_v25 = vrot.slane %v1665_v10, %v900_v24 }
 0x488   :  { %v1338_v30 = vpack.i.bf16 %v772_v28, %v771_v27  ;;  %v907_v32 = vrot.slane %v1665_v10, %v906_v26 }
 0x48a   :  { %1339 = vrot.lane.b32.xlu1 %v1338_v30, %s1537_s11 }
 0x4ee   :  { %v1330_v33 = vpop.permute.xlu1 %1329 }
 0x4ef   :  { %v1332_v36 = vunpack.i.h.bf16 %v1330_v33  ;;  %v1331_v37 = vunpack.i.l.bf16 %v1330_v33 }
 0x4f1   :  { %v797_v44 = vsel %vm255_vm2, %v765_v41, %v1331_v37  ;;  %v798_v45 = vsel %vm255_vm2, %v766_v42, %v1332_v36  ;;  %v1361_v37 = vld [vmem:[%s1883_s5 + $0x10] sm:$0xff]   ;;  %s1538_s5 = smov [#allocation10]  }
 0x4f2   :  { %s1098_s13 = sshll.u32 %s1538_s5, 4  ;;  %s1099_s13 = int_to_ptr.vmem [resolvable:$true] %s1098_s13 }
 0x4f3   :  { %s1491_s14 = scalar_lea.vmem %s1099_s13, 256  ;;  %p1496_p5 = scmp.lt.s32.totalorder %s1099_s13, %s1099_s13 }
 0x4f4   :  { %v1335_v34 = vpop.permute.xlu0 %1334  ;;  %p1492_p4 = scmp.ne.s32.totalorder %s1099_s13, %s1491_s14  ;;  %p1497_p6 = scmp.lt.s32.totalorder %s1491_s14, %s1491_s14 }
 0x4f5   :  { %v1337_v39 = vunpack.i.h.bf16 %v1335_v34  ;;  %v1336_v40 = vunpack.i.l.bf16 %v1335_v34 }
 0x4f6   :  { %p1498_p7 = por %p1497_p6, %p1496_p5 }
 0x4f7   :  { %v801_v48 = vsel %vm799_vm5, %v798_v45, %v1337_v39  ;;  %v800_v49 = vsel %vm799_vm5, %v797_v44, %v1336_v40  ;;  %v913_v39 = vsub.s32 2, %v1662_v8 }
 0x4f8   :  { %p1499_p8 = pnand %p1498_p7, %p1492_p4 }
 0x4f9   :  { %v914_v40 = vrot.slane %v1665_v10, %v913_v39 }
 0x4fc   :  { %v1340_v43 = vpop.permute.xlu1 %1339 }
 0x4fd   :  { %v1342_v46 = vunpack.i.h.bf16 %v1340_v43  ;;  %v1341_v47 = vunpack.i.l.bf16 %v1340_v43 }
 0x4ff   :  { %v802_v50 = vsel %vm471_vm4, %v800_v49, %v1341_v47  ;;  %v803_v51 = vsel %vm471_vm4, %v801_v48, %v1342_v46 }
 0x500   :  { %v808_v52 = vpack.c.bf16 %v803_v51, %v802_v50 }
 0x502   :  { %1257 = vmatmul.mubr.msk.bf16.vlgmr.msra.gmra.mrb[16].mxu1 %vm105_vm1, %v808_v52 }
 0x503   :  { %1276 = vmatprep.mubr.msk.bf16.mxu1 %vm1530_vm0, %v1529_v0  ;;  %1269 = vmatpush3.bf16.msra.mxu1 %v1359_v16  ;;  %v1081_v16 = vsub.s32 6, %v1662_v8 }
 0x504   :  { %1270 = vmatprep.subr.bf16.mxu1 %v1529_v0 }
 0x507   :  { %1271 = vmatpush3.bf16.msra.mxu1 %v1360_v17  ;;  %v1087_v17 = vsub.s32 7, %v1662_v8 }
 0x508   :  { %1272 = vmatprep.subr.bf16.mxu1 %v1529_v0 }
 0x50b   :  { %1273 = vmatpush3.bf16.msra.mxu1 %v1361_v37 }
 0x50c   :  { %1274 = vmatprep.subr.bf16.mxu1 %v1529_v0  ;;  %v980_v0 = vsub.s32 3, %v1662_v8 }
 0x50e   :  { %v981_v50 = vrot.slane %v1665_v10, %v980_v0 }
 0x50f   :  { %1275 = vmatpush3.bf16.msra.mxu1 %v1362_v38 }
 0x5d5   :  { %v862_v55 = vpop.f32.mrb[16].mxu1 }
 0x5d6   :  { %v863_v56 = vadd.f32 %v862_v55, %v812_v54  ;;  %v1258_v57 = vpop.f32.mrb[17].mxu1 }
 0x5d7   :  { %v865_v58 = vpop.f32.mrb[18].mxu1 }
 0x5d8   :  { %v866_v59 = vadd.f32 %v865_v58, %v812_v54  ;;  %v1259_v60 = vpop.f32.mrb[19].mxu1  ;;  %v869_v61 = vadd.f32 %v863_v56, %v1644_v3 }
 0x5da   :  { %v871_v62 = vsel %vm105_vm1, %v869_v61, 0.0  ;;  %v870_v63 = vadd.f32 %v866_v59, %v1649_v4  ;;  %v1358_v4 = vld [vmem:[#allocation7 + $0x14] ss:$8 sps:$4 sm:$0xff]  }
 0x5db   :  { %872 = vadd.xlane.f32.xlu1 %v871_v62  ;;  %1263 = vmatpush3.bf16.msra.mxu0 %v1358_v4 }
 0x5dc   :  { %v874_v1 = vsel %vm105_vm1, %v870_v63, 0.0 }
 0x5dd   :  { %875 = vadd.xlane.f32.xlu0 %v874_v1 }
 0x668   :  { %v873_v2 = vpop.xlane.xlu1 %872 }
 0x669   :  { %v878_v5 = vmul.f32 0.03125, %v873_v2 }
 0x66a   :  { %v876_v6 = vpop.xlane.xlu0 %875 }
 0x66b   :  { %v880_v7 = vsub.f32 %v869_v61, %v878_v5  ;;  %v879_v9 = vmul.f32 0.03125, %v876_v6 }
 0x66d   :  { %v881_v11 = vsub.f32 %v870_v63, %v879_v9  ;;  %v882_v12 = vmul.f32 %v880_v7, %v880_v7 }
 0x66f   :  { %v884_v13 = vsel %vm105_vm1, %v882_v12, 0.0  ;;  %v883_v14 = vmul.f32 %v881_v11, %v881_v11 }
 0x670   :  { %885 = vadd.xlane.f32.xlu0 %v884_v13 }
 0x671   :  { %v887_v3 = vsel %vm105_vm1, %v883_v14, 0.0 }
 0x672   :  { %888 = vadd.xlane.f32.xlu1 %v887_v3 }
 0x6fd   :  { %v886_v18 = vpop.xlane.xlu0 %885 }
 0x6fe   :  { %v890_v19 = vmul.f32 0.03125, %v886_v18  ;;  %v1082_v18 = vrot.slane %v1665_v10, %v1081_v16 }
 0x6ff   :  { %v889_v20 = vpop.xlane.xlu1 %888 }
 0x700   :  { %v892_v21 = vadd.f32 1e-05, %v890_v19  ;;  %v891_v22 = vmul.f32 0.03125, %v889_v20 }
 0x702   :  { %1395 = vrsqrt.f32 %v892_v21  ;;  %v893_v23 = vadd.f32 1e-05, %v891_v22  ;;  %v1088_v21 = vrot.slane %v1665_v10, %v1087_v17 }
 0x704   :  { %1397 = vrsqrt.f32 %v893_v23 }
 0x70c   :  { %v1396_v27 = vpop.eup %1395 }
 0x70d   :  { %v896_v28 = vmul.f32 %v1396_v27, %v880_v7 }
 0x70e   :  { %v1398_v29 = vpop.eup %1397 }
 0x70f   :  { %v902_v30 = vmul.f32 %v901_v25, %v896_v28  ;;  %v897_v31 = vmul.f32 %v1398_v29, %v881_v11 }
 0x711   :  { %v903_v33 = vmul.f32 %v901_v25, %v897_v31  ;;  %v908_v34 = vadd.f32 %v907_v32, %v902_v30 }
 0x713   :  { %v909_v35 = vadd.f32 %v907_v32, %v903_v33 }
 0x715   :  { %v910_v36 = vpack.c.bf16 %v909_v35, %v908_v34 }
 0x717   :  { %1265 = vmatmul.mubr.msk.bf16.vlgmr.msra.gmra.mrb[20].mxu0 %vm105_vm1, %v910_v36 }
 0x7ea   :  { %v960_v41 = vpop.f32.mrb[20].mxu0 }
 0x7eb   :  { %v961_v42 = vadd.f32 %v960_v41, %v914_v40  ;;  %v1266_v43 = vpop.f32.mrb[21].mxu0 }
 0x7ec   :  { %v963_v44 = vpop.f32.mrb[22].mxu0 }
 0x7ed   :  { %v964_v45 = vadd.f32 %v963_v44, %v914_v40  ;;  %v1267_v46 = vpop.f32.mrb[23].mxu0  ;;  %v967_v47 = vmax.f32 %v961_v42, 0.0 }
 0x7ef   :  { %v968_v48 = vmax.f32 %v964_v45, 0.0 }
 0x7f1   :  { %v969_v49 = vpack.c.bf16 %v968_v48, %v967_v47 }
 0x7f3   :  { %1277 = vmatmul.mubr.msk.bf16.vlgmr.msra.gmra.mrb[20].mxu1 %vm1006_vm6, %v969_v49 }
 0x8c6   :  { %v1044_v51 = vpop.f32.mrb[20].mxu1 }
 0x8c7   :  { %v1045_v52 = vadd.f32 %v1044_v51, %v981_v50  ;;  %v1278_v53 = vpop.f32.mrb[21].mxu1 }
 0x8c8   :  { %v1047_v54 = vpop.f32.mrb[22].mxu1 }
 0x8c9   :  { %v1048_v55 = vadd.f32 %v1047_v54, %v981_v50  ;;  %v1279_v56 = vpop.f32.mrb[23].mxu1  ;;  %v1051_v57 = vadd.f32 %v1045_v52, %v908_v34 }
 0x8cb   :  { %v1053_v58 = vsel %vm105_vm1, %v1051_v57, 0.0  ;;  %v1052_v59 = vadd.f32 %v1048_v55, %v909_v35 }
 0x8cc   :  { %1054 = vadd.xlane.f32.xlu0 %v1053_v58 }
 0x8cd   :  { %v1056_v60 = vsel %vm105_vm1, %v1052_v59, 0.0 }
 0x8ce   :  { %1057 = vadd.xlane.f32.xlu1 %v1056_v60 }
 0x959   :  { %v1055_v61 = vpop.xlane.xlu0 %1054 }
 0x95a   :  { %v1059_v62 = vmul.f32 0.03125, %v1055_v61 }
 0x95b   :  { %v1058_v63 = vpop.xlane.xlu1 %1057 }
 0x95c   :  { %v1061_v1 = vsub.f32 %v1051_v57, %v1059_v62  ;;  %v1060_v2 = vmul.f32 0.03125, %v1058_v63 }
 0x95e   :  { %v1062_v5 = vsub.f32 %v1052_v59, %v1060_v2  ;;  %v1063_v6 = vmul.f32 %v1061_v1, %v1061_v1 }
 0x960   :  { %v1065_v7 = vsel %vm105_vm1, %v1063_v6, 0.0  ;;  %v1064_v9 = vmul.f32 %v1062_v5, %v1062_v5 }
 0x961   :  { %1066 = vadd.xlane.f32.xlu0 %v1065_v7 }
 0x962   :  { %v1068_v11 = vsel %vm105_vm1, %v1064_v9, 0.0 }
 0x963   :  { %1069 = vadd.xlane.f32.xlu1 %v1068_v11 }
 0x9ee   :  { %v1067_v12 = vpop.xlane.xlu0 %1066 }
 0x9ef   :  { %v1071_v13 = vmul.f32 0.03125, %v1067_v12 }
 0x9f0   :  { %v1070_v14 = vpop.xlane.xlu1 %1069 }
 0x9f1   :  { %v1073_v3 = vadd.f32 1e-05, %v1071_v13  ;;  %v1072_v15 = vmul.f32 0.03125, %v1070_v14 }
 0x9f3   :  { %1399 = vrsqrt.f32 %v1073_v3  ;;  %v1074_v4 = vadd.f32 1e-05, %v1072_v15 }
 0x9f5   :  { %1401 = vrsqrt.f32 %v1074_v4 }
 0x9fd   :  { %v1400_v19 = vpop.eup %1399 }
 0x9fe   :  { %v1077_v20 = vmul.f32 %v1400_v19, %v1061_v1 }
 0x9ff   :  { %v1402_v22 = vpop.eup %1401 }
 0xa00   :  { %v1078_v23 = vmul.f32 %v1402_v22, %v1062_v5  ;;  %v1083_v24 = vmul.f32 %v1082_v18, %v1077_v20 }
 0xa02   :  { %v1084_v25 = vmul.f32 %v1082_v18, %v1078_v23  ;;  %v1089_v26 = vadd.f32 %v1088_v21, %v1083_v24 }
 0xa04   :  { %v1090_v27 = vadd.f32 %v1088_v21, %v1084_v25  ;;  %1091 = vst.msk [vmem:[#allocation10] sm:$0xff] %vm105_vm1, %v1089_v26 }
 0xa06   :  { %1092 = vst.msk [vmem:[#allocation10 + $0x8] sm:$0xff] %vm105_vm1, %v1090_v27 }
 0xa07   :  { %1502 = shalt.err (!%p1499_p8)
}
 0xa08   :  { %s1503_s1 = scalar_lea.hbm %s1885_s7, 256 }
 0xa09   :  { %p1504_p9 = scmp.ne.s32.totalorder %s1885_s7, %s1503_s1  ;;  %p1507_p10 = scmp.lt.u32.totalorder %s1503_s1, %s1885_s7 }
 0xa0b   :  { %p1509_p11 = pnand %p1507_p10, %p1504_p9 }
 0xa0d   :  { %1512 = shalt.err (!%p1509_p11)
}
 0xa0e   :  { %1104 = dma.vmem_to_hbm [thread:$0]  %s1099_s13, 256, %s1885_s7, [#allocation4], %s1525_s2, %s1525_s2, %s1526_s25  }
 0xa0f   :  { %1519 = dma.done.wait [#allocation4], 256  }
 0xa10   :  { %1520 = vsyncadd [#allocation4], 4294967040 }
 0xa11   :  { %1108 = vsyncpa [#allocation3], 1 }
 0xa12   :  { %1109 = vsyncpa [#allocation6], 1 }
 0xa13   :  { %1110 = vsyncpa [#allocation9], 1 }
 0xa14   :  { %1111 = vsyncpa [#allocation4], 1 }

</bundles_post_ra>
